<compile_context>
chip_gen: v6e
topology: v6e:2x2x1
jax: 0.10.0
libtpu: 0.0.40
codegen_flags: <defaults>
</compile_context>

<pallas_src>
import math

import jax
import jax.numpy as jnp
from jax.experimental import pallas as pl
from jax.experimental.pallas import tpu as pltpu


# ---------------------------------------------------------------------------
# Config (small, deterministic synthetic network; all activations = ReLU).
# ---------------------------------------------------------------------------
BATCH = 8
INPUT_DIMS = 16
SHARED_HIDDEN_DIMS = (32, 32)
MEAN_HIDDEN_DIMS = (32,)
LOG_VAR_HIDDEN_DIMS = (32,)
VALUE_HIDDEN_DIMS = (32,)
OUTPUT_DIMS = 4

P = 128           # padded lane width for every layer
ONE_LANE = P - 1  # lane carrying the constant 1.0 (bias folding)


def _round_up(x, m):
    return ((x + m - 1) // m) * m


# ---------------------------------------------------------------------------
# Parameter construction (mirrors build_layers + weight_initialization):
#   hidden Linears (followed by ReLU)  -> He normal, zero bias
#   output heads (no activation after) -> default PyTorch uniform init
# ---------------------------------------------------------------------------
def _he_linear(key, fan_in, fan_out):
    std = math.sqrt(2.0 / fan_in)
    w = jax.random.normal(key, (fan_in, fan_out), dtype=jnp.float32) * std
    b = jnp.zeros((fan_out,), dtype=jnp.float32)
    return w, b


def _default_linear(key, fan_in, fan_out):
    bound = 1.0 / math.sqrt(fan_in)
    kw, kb = jax.random.split(key)
    w = jax.random.uniform(kw, (fan_in, fan_out), dtype=jnp.float32,
                           minval=-bound, maxval=bound)
    b = jax.random.uniform(kb, (fan_out,), dtype=jnp.float32,
                           minval=-bound, maxval=bound)
    return w, b


def _make_params(key):
    keys = jax.random.split(key, 10)
    params = {}
    # shared_layers
    params["shared"] = [
        _he_linear(keys[0], INPUT_DIMS, SHARED_HIDDEN_DIMS[0]),
        _he_linear(keys[1], SHARED_HIDDEN_DIMS[0], SHARED_HIDDEN_DIMS[1]),
    ]
    s_out = SHARED_HIDDEN_DIMS[-1]
    # mean branch
    params["mean_hidden"] = _he_linear(keys[2], s_out, MEAN_HIDDEN_DIMS[0])
    params["mean_out"] = _default_linear(keys[3], MEAN_HIDDEN_DIMS[-1], OUTPUT_DIMS)
    # log_var branch
    params["log_var_hidden"] = _he_linear(keys[4], s_out, LOG_VAR_HIDDEN_DIMS[0])
    params["log_var_out"] = _default_linear(keys[5], LOG_VAR_HIDDEN_DIMS[-1], OUTPUT_DIMS)
    # value branch
    params["value_hidden"] = _he_linear(keys[6], s_out, VALUE_HIDDEN_DIMS[0])
    params["value_out"] = _default_linear(keys[7], VALUE_HIDDEN_DIMS[-1], 1)
    return params


# ---------------------------------------------------------------------------
# Pack everything into one (4, 128, 128) slab with biases folded into the
# matmuls via the constant-1 lane.
# ---------------------------------------------------------------------------
def _pack_params(params):
    (w0, b0), (w1, b1) = params["shared"]
    wm, bm = params["mean_hidden"]
    wmo, bmo = params["mean_out"]
    wlv, blv = params["log_var_hidden"]
    wlvo, blvo = params["log_var_out"]
    wv, bv = params["value_hidden"]
    wvo, bvo = params["value_out"]

    hm, hl, hv = wm.shape[1], wlv.shape[1], wv.shape[1]
    a = wmo.shape[1]  # OUTPUT_DIMS
    assert max(w0.shape[0], hm + hl + hv, 2 * a + 1) < ONE_LANE

    slab = jnp.zeros((4, P, P), dtype=jnp.float32)

    # Layer 0: shared Linear(INPUT_DIMS -> 32) + ReLU
    slab = slab.at[0, :w0.shape[0], :w0.shape[1]].set(w0)
    slab = slab.at[0, ONE_LANE, :w0.shape[1]].set(b0)
    slab = slab.at[0, ONE_LANE, ONE_LANE].set(1.0)   # propagate the ones lane

    # Layer 1: shared Linear(32 -> 32) + ReLU
    slab = slab.at[1, :w1.shape[0], :w1.shape[1]].set(w1)
    slab = slab.at[1, ONE_LANE, :w1.shape[1]].set(b1)
    slab = slab.at[1, ONE_LANE, ONE_LANE].set(1.0)

    # Layer 2: combined head hidden layers (mean | log_var | value) + ReLU
    slab = slab.at[2, :wm.shape[0], 0:hm].set(wm)
    slab = slab.at[2, ONE_LANE, 0:hm].set(bm)
    slab = slab.at[2, :wlv.shape[0], hm:hm + hl].set(wlv)
    slab = slab.at[2, ONE_LANE, hm:hm + hl].set(blv)
    slab = slab.at[2, :wv.shape[0], hm + hl:hm + hl + hv].set(wv)
    slab = slab.at[2, ONE_LANE, hm + hl:hm + hl + hv].set(bv)
    slab = slab.at[2, ONE_LANE, ONE_LANE].set(1.0)

    # Layer 3: combined output heads -> lanes [0:A)=mean, [A:2A)=log_var, [2A]=value
    slab = slab.at[3, 0:hm, 0:a].set(wmo)
    slab = slab.at[3, ONE_LANE, 0:a].set(bmo)
    slab = slab.at[3, hm:hm + hl, a:2 * a].set(wlvo)
    slab = slab.at[3, ONE_LANE, a:2 * a].set(blvo)
    slab = slab.at[3, hm + hl:hm + hl + hv, 2 * a:2 * a + 1].set(wvo)
    slab = slab.at[3, ONE_LANE, 2 * a:2 * a + 1].set(bvo)
    return slab


# ---------------------------------------------------------------------------
# Fused kernel: 4 MXU matmuls on lane-dense [TILE_B, 128] tiles, ReLU on VPU.
# Biases ride inside the matmuls (ones lane), output is lane-dense.
# ---------------------------------------------------------------------------
def _ppo_fused_kernel(x_ref, w_ref, out_ref):
    h = x_ref[...]                                                     # [tb, 128]
    h = jnp.maximum(jnp.dot(h, w_ref[0], preferred_element_type=jnp.float32), 0.0)
    h = jnp.maximum(jnp.dot(h, w_ref[1], preferred_element_type=jnp.float32), 0.0)
    h = jnp.maximum(jnp.dot(h, w_ref[2], preferred_element_type=jnp.float32), 0.0)
    out_ref[...] = jnp.dot(h, w_ref[3],
                           preferred_element_type=jnp.float32).astype(out_ref.dtype)


def ppo_continuous_forward(x, slab, *, tile_b=512):
    """x: [B, INPUT_DIMS] f32 -> (mean [B,4], log_var [B,4], value [B,1])."""
    B, D = x.shape

    # Lane-pad input and append the constant-1 lane (bias folding).
    x_pad = jnp.zeros((B, P), dtype=jnp.float32)
    x_pad = x_pad.at[:, :D].set(x)
    x_pad = x_pad.at[:, ONE_LANE].set(1.0)

    # Batch tiling: sublane-aligned, large tiles for real PPO batches.
    tb = min(tile_b, _round_up(B, 8))
    Bp = _round_up(B, tb)
    if Bp != B:
        x_pad = jnp.pad(x_pad, ((0, Bp - B), (0, 0)))
    grid = (Bp // tb,)

    flops = 2 * Bp * P * P * 4
    bytes_accessed = x_pad.size * 4 + slab.size * 4 + Bp * P * 4

    out = pl.pallas_call(
        _ppo_fused_kernel,
        out_shape=jax.ShapeDtypeStruct((Bp, P), jnp.float32),
        grid_spec=pltpu.PrefetchScalarGridSpec(
            num_scalar_prefetch=0,
            grid=grid,
            in_specs=[
                pl.BlockSpec((tb, P), lambda i: (i, 0)),        # activations
                pl.BlockSpec((4, P, P), lambda i: (0, 0, 0)),   # weights: VMEM-resident
            ],
            out_specs=pl.BlockSpec((tb, P), lambda i: (i, 0)),
        ),
        compiler_params=pltpu.CompilerParams(
            dimension_semantics=("parallel",)),                 # both TCs on v7x
        cost_estimate=pl.CostEstimate(flops=flops, transcendentals=0,
                                      bytes_accessed=bytes_accessed),
    )(x_pad, slab)

    a = OUTPUT_DIMS
    mean = out[:B, 0:a]
    log_var = out[:B, a:2 * a]
    value = out[:B, 2 * a:2 * a + 1]
    return mean, log_var, value


# ---------------------------------------------------------------------------
# Pure-JAX reference (unpadded params) for correctness checking.
# ---------------------------------------------------------------------------
def _reference_forward(x, params):
    def relu_stack(h, layers):
        for w, b in layers:
            h = jnp.maximum(h @ w + b, 0.0)
        return h

    shared = relu_stack(x, params["shared"])
    mean_x = relu_stack(shared, [params["mean_hidden"]])
    wmo, bmo = params["mean_out"]
    mean = mean_x @ wmo + bmo
    log_var_x = relu_stack(shared, [params["log_var_hidden"]])
    wlvo, blvo = params["log_var_out"]
    log_var = log_var_x @ wlvo + blvo
    value_x = relu_stack(shared, [params["value_hidden"]])
    wvo, bvo = params["value_out"]
    value = value_x @ wvo + bvo
    return mean, log_var, value


if __name__ == "__main__":
    key = jax.random.PRNGKey(0)
    key, x_key = jax.random.split(key)
    x = jax.random.normal(x_key, (BATCH, INPUT_DIMS), dtype=jnp.float32)

    params = _make_params(key)
    slab = _pack_params(params)

    mean, log_var, value = ppo_continuous_forward(x, slab)
    jax.block_until_ready((mean, log_var, value))

    mean_ref, log_var_ref, value_ref = _reference_forward(x, params)
    assert mean.shape == (BATCH, OUTPUT_DIMS), mean.shape
    assert log_var.shape == (BATCH, OUTPUT_DIMS), log_var.shape
    assert value.shape == (BATCH, 1), value.shape
    for got, ref, name in ((mean, mean_ref, "mean"),
                           (log_var, log_var_ref, "log_var"),
                           (value, value_ref, "value")):
        err = float(jnp.max(jnp.abs(got - ref)))
        assert jnp.allclose(got, ref, atol=1e-5, rtol=1e-5), (
            f"{name} mismatch, max abs err {err}")

    print("KERNEL_OK")
</pallas_src>

<mosaic_0001>
module attributes {stable_mosaic.version = 11 : i64} {
  func.func @_ppo_fused_kernel(%arg0: i32, %arg1: memref<8x128xf32, #tpu.memory_space<vmem>>, %arg2: memref<4x128x128xf32, #tpu.memory_space<vmem>>, %arg3: memref<8x128xf32, #tpu.memory_space<vmem>>) attributes {dimension_semantics = [#tpu.dimension_semantics<parallel>], iteration_bounds = array<i64: 1>, scalar_prefetch = 0 : i64, scratch_operands = 0 : i64, tpu.core_type = #tpu.core_type<tc>, window_params = [{transform_indices = @transform_0, window_bounds = array<i64: 8, 128>}, {pipeline_mode = #tpu.pipeline_mode<synchronous>, transform_indices = @transform_1, window_bounds = array<i64: 4, 128, 128>}, {transform_indices = @transform_2, window_bounds = array<i64: 8, 128>}]} {
    %c0 = arith.constant 0 : index
    %c0_0 = arith.constant 0 : index
    %0 = vector.load %arg1[%c0, %c0_0] : memref<8x128xf32, #tpu.memory_space<vmem>>, vector<8x128xf32>
    %c0_1 = arith.constant 0 : index
    %c0_2 = arith.constant 0 : index
    %c0_3 = arith.constant 0 : index
    %1 = vector.load %arg2[%c0_1, %c0_2, %c0_3] : memref<4x128x128xf32, #tpu.memory_space<vmem>>, vector<1x128x128xf32>
    %2 = vector.shape_cast %1 : vector<1x128x128xf32> to vector<128x128xf32>
    %cst = arith.constant dense<0.000000e+00> : vector<8x128xf32>
    %3 = tpu.matmul %0, %2, %cst {dimension_numbers = #tpu.dot_dimension_numbers<[1], [0], [0], [1], [0, 0, 1, 1], [], []>} : vector<8x128xf32>, vector<128x128xf32>, vector<8x128xf32> -> vector<8x128xf32>
    %cst_4 = arith.constant 0.000000e+00 : f32
    %4 = vector.broadcast %cst_4 : f32 to vector<8x128xf32>
    %5 = arith.maximumf %3, %4 : vector<8x128xf32>
    %c1 = arith.constant 1 : index
    %c0_5 = arith.constant 0 : index
    %c0_6 = arith.constant 0 : index
    %6 = vector.load %arg2[%c1, %c0_5, %c0_6] : memref<4x128x128xf32, #tpu.memory_space<vmem>>, vector<1x128x128xf32>
    %7 = vector.shape_cast %6 : vector<1x128x128xf32> to vector<128x128xf32>
    %cst_7 = arith.constant dense<0.000000e+00> : vector<8x128xf32>
    %8 = tpu.matmul %5, %7, %cst_7 {dimension_numbers = #tpu.dot_dimension_numbers<[1], [0], [0], [1], [0, 0, 1, 1], [], []>} : vector<8x128xf32>, vector<128x128xf32>, vector<8x128xf32> -> vector<8x128xf32>
    %cst_8 = arith.constant 0.000000e+00 : f32
    %9 = vector.broadcast %cst_8 : f32 to vector<8x128xf32>
    %10 = arith.maximumf %8, %9 : vector<8x128xf32>
    %c2 = arith.constant 2 : index
    %c0_9 = arith.constant 0 : index
    %c0_10 = arith.constant 0 : index
    %11 = vector.load %arg2[%c2, %c0_9, %c0_10] : memref<4x128x128xf32, #tpu.memory_space<vmem>>, vector<1x128x128xf32>
    %12 = vector.shape_cast %11 : vector<1x128x128xf32> to vector<128x128xf32>
    %cst_11 = arith.constant dense<0.000000e+00> : vector<8x128xf32>
    %13 = tpu.matmul %10, %12, %cst_11 {dimension_numbers = #tpu.dot_dimension_numbers<[1], [0], [0], [1], [0, 0, 1, 1], [], []>} : vector<8x128xf32>, vector<128x128xf32>, vector<8x128xf32> -> vector<8x128xf32>
    %cst_12 = arith.constant 0.000000e+00 : f32
    %14 = vector.broadcast %cst_12 : f32 to vector<8x128xf32>
    %15 = arith.maximumf %13, %14 : vector<8x128xf32>
    %c3 = arith.constant 3 : index
    %c0_13 = arith.constant 0 : index
    %c0_14 = arith.constant 0 : index
    %16 = vector.load %arg2[%c3, %c0_13, %c0_14] : memref<4x128x128xf32, #tpu.memory_space<vmem>>, vector<1x128x128xf32>
    %17 = vector.shape_cast %16 : vector<1x128x128xf32> to vector<128x128xf32>
    %cst_15 = arith.constant dense<0.000000e+00> : vector<8x128xf32>
    %18 = tpu.matmul %15, %17, %cst_15 {dimension_numbers = #tpu.dot_dimension_numbers<[1], [0], [0], [1], [0, 0, 1, 1], [], []>} : vector<8x128xf32>, vector<128x128xf32>, vector<8x128xf32> -> vector<8x128xf32>
    %c0_16 = arith.constant 0 : index
    %c0_17 = arith.constant 0 : index
    %19 = vector.load %arg3[%c0_16, %c0_17] : memref<8x128xf32, #tpu.memory_space<vmem>>, vector<8x128xf32>
    tpu.vector_store %arg3[%c0_16, %c0_17], %18 {strides = array<i32>} : memref<8x128xf32, #tpu.memory_space<vmem>>, vector<8x128xf32>,
    return
  }
  func.func @transform_0(%arg0: i32) -> (i32, i32) {
    %c0_i32 = arith.constant 0 : i32
    %c0_i32_0 = arith.constant 0 : i32
    return %arg0, %c0_i32 : i32, i32
  }
  func.func @transform_1(%arg0: i32) -> (i32, i32, i32) {
    %c0_i32 = arith.constant 0 : i32
    %c0_i32_0 = arith.constant 0 : i32
    %c0_i32_1 = arith.constant 0 : i32
    %c0_i32_2 = arith.constant 0 : i32
    return %c0_i32, %c0_i32_0, %c0_i32_1 : i32, i32, i32
  }
  func.func @transform_2(%arg0: i32) -> (i32, i32) {
    %c0_i32 = arith.constant 0 : i32
    %c0_i32_0 = arith.constant 0 : i32
    return %arg0, %c0_i32 : i32, i32
  }
}

</mosaic_0001>

<bundles_post_ra>
// kernel: tpu_custom_call.1
= control target key start
LH: loop header
LB: loop body
LE: loop exit
PB: predicated region body
PF: predicated region fallthrough
CT: control target
= control target key end

     0   :  { %7 = vsyncpa [#allocation3], 0  ;;  %s790_s0 = inlined_call_operand.hbm [shape: f32[8,128], index: 0, kind: input, shape index: {}]   ;;  %s791_s1 = inlined_call_operand.hbm [shape: f32[4,128,128], index: 1, kind: input, shape index: {}]   ;;  %s792_s2 = inlined_call_operand.hbm [shape: f32[8,128], index: 2, kind: output, shape index: {}]  }
   0x1   :  { %8 = vsyncpa [#allocation6], 0 }
   0x2   :  { %9 = vsyncpa [#allocation4], 0  ;;  %s687_s9 = smov [#allocation2]   ;;  %s688_s11 = smov [#allocation5]  }
   0x3   :  { %s16_s10 = sshll.u32 %s687_s9, 4  ;;  %s25_s12 = sshll.u32 %s688_s11, 4  ;;  %s17_s10 = int_to_ptr.vmem [resolvable:$true] %s16_s10  ;;  %s26_s12 = int_to_ptr.vmem [resolvable:$true] %s25_s12 }
   0x4   :  { %s629_s13 = scalar_lea.vmem %s17_s10, 128  ;;  %p634_p1 = scmp.lt.s32.totalorder %s17_s10, %s17_s10 }
   0x5   :  { %p630_p0 = scmp.ne.s32.totalorder %s17_s10, %s629_s13  ;;  %p635_p2 = scmp.lt.s32.totalorder %s629_s13, %s629_s13 }
   0x7   :  { %p636_p3 = por %p635_p2, %p634_p1 }
   0x9   :  { %p637_p4 = pnand %p636_p3, %p630_p0 }
   0xb   :  { %640 = shalt.err (!%p637_p4)
}
   0xc   :  { %19 = dma.hbm_to_vmem [thread:$0]  %s790_s0, 128, %s17_s10, [#allocation3]  }
   0xd   :  { %s649_s16 = scalar_lea.vmem %s26_s12, 8192  ;;  %p654_p6 = scmp.lt.s32.totalorder %s26_s12, %s26_s12 }
   0xe   :  { %p650_p5 = scmp.ne.s32.totalorder %s26_s12, %s649_s16  ;;  %p655_p7 = scmp.lt.s32.totalorder %s649_s16, %s649_s16 }
  0x10   :  { %p656_p8 = por %p655_p7, %p654_p6 }
  0x12   :  { %p657_p9 = pnand %p656_p8, %p650_p5 }
  0x14   :  { %660 = shalt.err (!%p657_p9)
}
  0x15   :  { %s689_s17 = smov 128   ;;  %s690_s18 = smov 8  }
  0x16   :  { %31 = dma.hbm_to_vmem [thread:$0]  %s791_s1, 8192, %s26_s12, [#allocation6], %s689_s17, %s689_s17, %s690_s18  }
  0x17   :  { %681 = dma.done.wait [#allocation3], 128  }
  0x18   :  { %682 = vsyncadd [#allocation3], 4294967168 }
  0x19   :  { %683 = dma.done.wait [#allocation6], 8192  }
  0x1a   :  { %684 = vsyncadd [#allocation6], 4294959104  ;;  %v691_v0 = vmov 0.0   ;;  %vm692_vm0 = vmmov 0   ;;  %v54_v1 = vld [vmem:[#allocation5 + $0x78] sm:$0xff]  ;;  %v53_v2 = vld [vmem:[#allocation5 + $0x70] sm:$0xff] }
  0x1b   :  { %474 = vmatprep.subr.mxu0 %v691_v0  ;;  %506 = vmatprep.mubr.msk.f32.mxu0 %vm692_vm0, %v691_v0  ;;  %v52_v3 = vld [vmem:[#allocation5 + $0x68] sm:$0xff]  ;;  %v51_v4 = vld [vmem:[#allocation5 + $0x60] sm:$0xff]  ;;  %v142_v5 = vld [vmem:[#allocation5 + $0xf8] sm:$0xff]  ;;  %s693_s0 = smov [#allocation7]  }
  0x1c   :  { %509 = vmatprep.subr.mxu1 %v691_v0  ;;  %541 = vmatprep.mubr.msk.f32.mxu1 %vm692_vm0, %v691_v0  ;;  %v50_v6 = vld [vmem:[#allocation5 + $0x58] sm:$0xff]  ;;  %v141_v7 = vld [vmem:[#allocation5 + $0xf0] sm:$0xff]  ;;  %v140_v8 = vld [vmem:[#allocation5 + $0xe8] sm:$0xff]  ;;  %s396_s1 = sshll.u32 %s693_s0, 4  ;;  %s397_s1 = int_to_ptr.vmem [resolvable:$true] %s396_s1 }
  0x1d   :  { %475 = vmatpush3.msra.mxu0 %v54_v1  ;;  %510 = vmatpush3.msra.mxu1 %v142_v5  ;;  %v49_v9 = vld [vmem:[#allocation5 + $0x50] sm:$0xff]  ;;  %v139_v10 = vld [vmem:[#allocation5 + $0xe0] sm:$0xff]  ;;  %v48_v11 = vld [vmem:[#allocation5 + $0x48] sm:$0xff]  ;;  %s661_s21 = scalar_lea.vmem %s397_s1, 128  ;;  %p666_p11 = scmp.lt.s32.totalorder %s397_s1, %s397_s1 }
  0x1e   :  { %476 = vmatprep.subr.mxu0 %v691_v0  ;;  %511 = vmatprep.subr.mxu1 %v691_v0  ;;  %v138_v12 = vld [vmem:[#allocation5 + $0xd8] sm:$0xff]  ;;  %v47_v13 = vld [vmem:[#allocation5 + $0x40] sm:$0xff]  ;;  %v137_v14 = vld [vmem:[#allocation5 + $0xd0] sm:$0xff]  ;;  %p662_p10 = scmp.ne.s32.totalorder %s397_s1, %s661_s21  ;;  %p667_p12 = scmp.lt.s32.totalorder %s661_s21, %s661_s21 }
  0x1f   :  { %477 = vmatpush3.msra.mxu0 %v53_v2  ;;  %512 = vmatpush3.msra.mxu1 %v141_v7  ;;  %v46_v15 = vld [vmem:[#allocation5 + $0x38] sm:$0xff]  ;;  %v136_v16 = vld [vmem:[#allocation5 + $0xc8] sm:$0xff]  ;;  %v45_v17 = vld [vmem:[#allocation5 + $0x30] sm:$0xff] }
  0x20   :  { %478 = vmatprep.subr.mxu0 %v691_v0  ;;  %513 = vmatprep.subr.mxu1 %v691_v0  ;;  %v135_v18 = vld [vmem:[#allocation5 + $0xc0] sm:$0xff]  ;;  %v44_v19 = vld [vmem:[#allocation5 + $0x28] sm:$0xff]  ;;  %v134_v20 = vld [vmem:[#allocation5 + $0xb8] sm:$0xff]  ;;  %p668_p13 = por %p667_p12, %p666_p11 }
  0x21   :  { %479 = vmatpush3.msra.mxu0 %v52_v3  ;;  %514 = vmatpush3.msra.mxu1 %v140_v8  ;;  %v43_v21 = vld [vmem:[#allocation5 + $0x20] sm:$0xff]  ;;  %v133_v22 = vld [vmem:[#allocation5 + $0xb0] sm:$0xff]  ;;  %v42_v23 = vld [vmem:[#allocation5 + $0x18] sm:$0xff] }
  0x22   :  { %480 = vmatprep.subr.mxu0 %v691_v0  ;;  %515 = vmatprep.subr.mxu1 %v691_v0  ;;  %v132_v24 = vld [vmem:[#allocation5 + $0xa8] sm:$0xff]  ;;  %v41_v25 = vld [vmem:[#allocation5 + $0x10] sm:$0xff]  ;;  %v131_v26 = vld [vmem:[#allocation5 + $0xa0] sm:$0xff]  ;;  %p669_p0 = pnand %p668_p13, %p662_p10 }
  0x23   :  { %481 = vmatpush3.msra.mxu0 %v51_v4  ;;  %516 = vmatpush3.msra.mxu1 %v139_v10  ;;  %v40_v27 = vld [vmem:[#allocation5 + $0x8] sm:$0xff]  ;;  %v130_v28 = vld [vmem:[#allocation5 + $0x98] sm:$0xff]  ;;  %v39_v29 = vld [vmem:[#allocation5] sm:$0xff] }
  0x24   :  { %482 = vmatprep.subr.mxu0 %v691_v0  ;;  %517 = vmatprep.subr.mxu1 %v691_v0  ;;  %v38_v30 = vld [vmem:[#allocation2] sm:$0xff]  ;;  %v129_v31 = vld [vmem:[#allocation5 + $0x90] sm:$0xff]  ;;  %v128_v32 = vld [vmem:[#allocation5 + $0x88] sm:$0xff] }
  0x25   :  { %483 = vmatpush3.msra.mxu0 %v50_v6  ;;  %518 = vmatpush3.msra.mxu1 %v138_v12  ;;  %v127_v33 = vld [vmem:[#allocation5 + $0x80] sm:$0xff]  ;;  %v230_v34 = vld [vmem:[#allocation5 + $0x178] sm:$0xff]  ;;  %v229_v35 = vld [vmem:[#allocation5 + $0x170] sm:$0xff] }
  0x26   :  { %484 = vmatprep.subr.mxu0 %v691_v0  ;;  %519 = vmatprep.subr.mxu1 %v691_v0  ;;  %v228_v36 = vld [vmem:[#allocation5 + $0x168] sm:$0xff]  ;;  %v227_v37 = vld [vmem:[#allocation5 + $0x160] sm:$0xff]  ;;  %v226_v38 = vld [vmem:[#allocation5 + $0x158] sm:$0xff] }
  0x27   :  { %485 = vmatpush3.msra.mxu0 %v49_v9  ;;  %520 = vmatpush3.msra.mxu1 %v137_v14  ;;  %v225_v39 = vld [vmem:[#allocation5 + $0x150] sm:$0xff]  ;;  %v224_v40 = vld [vmem:[#allocation5 + $0x148] sm:$0xff]  ;;  %v223_v41 = vld [vmem:[#allocation5 + $0x140] sm:$0xff] }
  0x28   :  { %486 = vmatprep.subr.mxu0 %v691_v0  ;;  %521 = vmatprep.subr.mxu1 %v691_v0  ;;  %v222_v42 = vld [vmem:[#allocation5 + $0x138] sm:$0xff]  ;;  %v221_v43 = vld [vmem:[#allocation5 + $0x130] sm:$0xff]  ;;  %v220_v44 = vld [vmem:[#allocation5 + $0x128] sm:$0xff] }
  0x29   :  { %487 = vmatpush3.msra.mxu0 %v48_v11  ;;  %522 = vmatpush3.msra.mxu1 %v136_v16  ;;  %v219_v45 = vld [vmem:[#allocation5 + $0x120] sm:$0xff]  ;;  %v218_v46 = vld [vmem:[#allocation5 + $0x118] sm:$0xff]  ;;  %v217_v47 = vld [vmem:[#allocation5 + $0x110] sm:$0xff] }
  0x2a   :  { %488 = vmatprep.subr.mxu0 %v691_v0  ;;  %523 = vmatprep.subr.mxu1 %v691_v0  ;;  %v216_v51 = vld [vmem:[#allocation5 + $0x108] sm:$0xff]  ;;  %v215_v52 = vld [vmem:[#allocation5 + $0x100] sm:$0xff]  ;;  %v318_v53 = vld [vmem:[#allocation5 + $0x1f8] sm:$0xff] }
  0x2b   :  { %489 = vmatpush3.msra.mxu0 %v47_v13  ;;  %524 = vmatpush3.msra.mxu1 %v135_v18  ;;  %v317_v54 = vld [vmem:[#allocation5 + $0x1f0] sm:$0xff]  ;;  %v316_v55 = vld [vmem:[#allocation5 + $0x1e8] sm:$0xff]  ;;  %v315_v56 = vld [vmem:[#allocation5 + $0x1e0] sm:$0xff] }
  0x2c   :  { %490 = vmatprep.subr.mxu0 %v691_v0  ;;  %525 = vmatprep.subr.mxu1 %v691_v0  ;;  %v314_v57 = vld [vmem:[#allocation5 + $0x1d8] sm:$0xff]  ;;  %v313_v58 = vld [vmem:[#allocation5 + $0x1d0] sm:$0xff]  ;;  %v312_v59 = vld [vmem:[#allocation5 + $0x1c8] sm:$0xff] }
  0x2d   :  { %491 = vmatpush3.msra.mxu0 %v46_v15  ;;  %526 = vmatpush3.msra.mxu1 %v134_v20  ;;  %v311_v60 = vld [vmem:[#allocation5 + $0x1c0] sm:$0xff]  ;;  %v310_v61 = vld [vmem:[#allocation5 + $0x1b8] sm:$0xff]  ;;  %v309_v62 = vld [vmem:[#allocation5 + $0x1b0] sm:$0xff] }
  0x2e   :  { %492 = vmatprep.subr.mxu0 %v691_v0  ;;  %527 = vmatprep.subr.mxu1 %v691_v0  ;;  %v308_v63 = vld [vmem:[#allocation5 + $0x1a8] sm:$0xff]  ;;  %v307_v1 = vld [vmem:[#allocation5 + $0x1a0] sm:$0xff]  ;;  %v306_v2 = vld [vmem:[#allocation5 + $0x198] sm:$0xff] }
  0x2f   :  { %493 = vmatpush3.msra.mxu0 %v45_v17  ;;  %528 = vmatpush3.msra.mxu1 %v133_v22  ;;  %v305_v3 = vld [vmem:[#allocation5 + $0x190] sm:$0xff]  ;;  %v304_v7 = vld [vmem:[#allocation5 + $0x188] sm:$0xff]  ;;  %v303_v8 = vld [vmem:[#allocation5 + $0x180] sm:$0xff] }
  0x30   :  { %494 = vmatprep.subr.mxu0 %v691_v0  ;;  %529 = vmatprep.subr.mxu1 %v691_v0 }
  0x31   :  { %495 = vmatpush3.msra.mxu0 %v44_v19  ;;  %530 = vmatpush3.msra.mxu1 %v132_v24 }
  0x32   :  { %496 = vmatprep.subr.mxu0 %v691_v0  ;;  %531 = vmatprep.subr.mxu1 %v691_v0 }
  0x33   :  { %497 = vmatpush3.msra.mxu0 %v43_v21  ;;  %532 = vmatpush3.msra.mxu1 %v131_v26 }
  0x34   :  { %498 = vmatprep.subr.mxu0 %v691_v0  ;;  %533 = vmatprep.subr.mxu1 %v691_v0 }
  0x35   :  { %499 = vmatpush3.msra.mxu0 %v42_v23  ;;  %534 = vmatpush3.msra.mxu1 %v130_v28 }
  0x36   :  { %500 = vmatprep.subr.mxu0 %v691_v0  ;;  %535 = vmatprep.subr.mxu1 %v691_v0 }
  0x37   :  { %501 = vmatpush3.msra.mxu0 %v41_v25  ;;  %536 = vmatpush3.msra.mxu1 %v129_v31 }
  0x38   :  { %502 = vmatprep.subr.mxu0 %v691_v0  ;;  %537 = vmatprep.subr.mxu1 %v691_v0 }
  0x39   :  { %503 = vmatpush3.msra.mxu0 %v40_v27  ;;  %538 = vmatpush3.msra.mxu1 %v128_v32 }
  0x3a   :  { %504 = vmatprep.subr.mxu0 %v691_v0  ;;  %539 = vmatprep.subr.mxu1 %v691_v0 }
  0x3b   :  { %505 = vmatpush3.msra.mxu0 %v39_v29  ;;  %540 = vmatpush3.msra.mxu1 %v127_v33 }
  0x3c   :  { %507 = vmatmul.mubr.f32.vlgmr.msra.gmra.mxu0 %v38_v30  ;;  %544 = vmatprep.subr.mxu0 %v691_v0 }
  0x3d   :  { %576 = vmatprep.mubr.msk.f32.mxu0 %vm692_vm0, %v691_v0  ;;  %579 = vmatprep.subr.mxu1 %v691_v0 }
  0x3e   :  { %545 = vmatpush3.msra.mxu0 %v230_v34 }
  0x3f   :  { %546 = vmatprep.subr.mxu0 %v691_v0 }
  0x40   :  { %547 = vmatpush3.msra.mxu0 %v229_v35 }
  0x41   :  { %548 = vmatprep.subr.mxu0 %v691_v0 }
  0x42   :  { %549 = vmatpush3.msra.mxu0 %v228_v36 }
  0x43   :  { %550 = vmatprep.subr.mxu0 %v691_v0 }
  0x44   :  { %551 = vmatpush3.msra.mxu0 %v227_v37 }
  0x45   :  { %552 = vmatprep.subr.mxu0 %v691_v0 }
  0x46   :  { %553 = vmatpush3.msra.mxu0 %v226_v38 }
  0x47   :  { %554 = vmatprep.subr.mxu0 %v691_v0 }
  0x48   :  { %555 = vmatpush3.msra.mxu0 %v225_v39 }
  0x49   :  { %556 = vmatprep.subr.mxu0 %v691_v0 }
  0x4a   :  { %557 = vmatpush3.msra.mxu0 %v224_v40 }
  0x4b   :  { %558 = vmatprep.subr.mxu0 %v691_v0 }
  0x4c   :  { %559 = vmatpush3.msra.mxu0 %v223_v41 }
  0x4d   :  { %560 = vmatprep.subr.mxu0 %v691_v0 }
  0x4e   :  { %561 = vmatpush3.msra.mxu0 %v222_v42 }
  0x4f   :  { %562 = vmatprep.subr.mxu0 %v691_v0 }
  0x50   :  { %563 = vmatpush3.msra.mxu0 %v221_v43 }
  0x51   :  { %564 = vmatprep.subr.mxu0 %v691_v0 }
  0x52   :  { %565 = vmatpush3.msra.mxu0 %v220_v44 }
  0x53   :  { %566 = vmatprep.subr.mxu0 %v691_v0 }
  0x54   :  { %567 = vmatpush3.msra.mxu0 %v219_v45 }
  0x55   :  { %568 = vmatprep.subr.mxu0 %v691_v0 }
  0x56   :  { %569 = vmatpush3.msra.mxu0 %v218_v46 }
  0x57   :  { %570 = vmatprep.subr.mxu0 %v691_v0 }
  0x58   :  { %571 = vmatpush3.msra.mxu0 %v217_v47 }
  0x59   :  { %572 = vmatprep.subr.mxu0 %v691_v0 }
  0x5a   :  { %573 = vmatpush3.msra.mxu0 %v216_v51 }
  0x5b   :  { %574 = vmatprep.subr.mxu0 %v691_v0 }
  0x5c   :  { %575 = vmatpush3.msra.mxu0 %v215_v52 }
  0xfc   :  { %v121_v48 = vpop.f32.mrf.mxu0 }
  0xfd   :  { %v125_v49 = vmax.f32 %v121_v48, 0.0 }
  0xfe   :  { %v508_v50 = vpop.f32.mrf.mxu0 }
  0xff   :  { %542 = vmatmul.mubr.f32.vlgmr.msra.gmra.mxu1 %v125_v49 }
 0x100   :  { %611 = vmatprep.mubr.msk.f32.mxu1 %vm692_vm0, %v691_v0  ;;  %580 = vmatpush3.msra.mxu1 %v318_v53 }
 0x101   :  { %581 = vmatprep.subr.mxu1 %v691_v0 }
 0x102   :  { %582 = vmatpush3.msra.mxu1 %v317_v54 }
 0x103   :  { %583 = vmatprep.subr.mxu1 %v691_v0 }
 0x104   :  { %584 = vmatpush3.msra.mxu1 %v316_v55 }
 0x105   :  { %585 = vmatprep.subr.mxu1 %v691_v0 }
 0x106   :  { %586 = vmatpush3.msra.mxu1 %v315_v56 }
 0x107   :  { %587 = vmatprep.subr.mxu1 %v691_v0 }
 0x108   :  { %588 = vmatpush3.msra.mxu1 %v314_v57 }
 0x109   :  { %589 = vmatprep.subr.mxu1 %v691_v0 }
 0x10a   :  { %590 = vmatpush3.msra.mxu1 %v313_v58 }
 0x10b   :  { %591 = vmatprep.subr.mxu1 %v691_v0 }
 0x10c   :  { %592 = vmatpush3.msra.mxu1 %v312_v59 }
 0x10d   :  { %593 = vmatprep.subr.mxu1 %v691_v0 }
 0x10e   :  { %594 = vmatpush3.msra.mxu1 %v311_v60 }
 0x10f   :  { %595 = vmatprep.subr.mxu1 %v691_v0 }
 0x110   :  { %596 = vmatpush3.msra.mxu1 %v310_v61 }
 0x111   :  { %597 = vmatprep.subr.mxu1 %v691_v0 }
 0x112   :  { %598 = vmatpush3.msra.mxu1 %v309_v62 }
 0x113   :  { %599 = vmatprep.subr.mxu1 %v691_v0 }
 0x114   :  { %600 = vmatpush3.msra.mxu1 %v308_v63 }
 0x115   :  { %601 = vmatprep.subr.mxu1 %v691_v0 }
 0x116   :  { %602 = vmatpush3.msra.mxu1 %v307_v1 }
 0x117   :  { %603 = vmatprep.subr.mxu1 %v691_v0 }
 0x118   :  { %604 = vmatpush3.msra.mxu1 %v306_v2 }
 0x119   :  { %605 = vmatprep.subr.mxu1 %v691_v0 }
 0x11a   :  { %606 = vmatpush3.msra.mxu1 %v305_v3 }
 0x11b   :  { %607 = vmatprep.subr.mxu1 %v691_v0 }
 0x11c   :  { %608 = vmatpush3.msra.mxu1 %v304_v7 }
 0x11d   :  { %609 = vmatprep.subr.mxu1 %v691_v0 }
 0x11e   :  { %610 = vmatpush3.msra.mxu1 %v303_v8 }
 0x1bf   :  { %v209_v4 = vpop.f32.mrf.mxu1 }
 0x1c0   :  { %v213_v5 = vmax.f32 %v209_v4, 0.0 }
 0x1c1   :  { %v543_v6 = vpop.f32.mrf.mxu1 }
 0x1c2   :  { %577 = vmatmul.mubr.f32.vlgmr.msra.gmra.mxu0 %v213_v5 }
 0x282   :  { %v297_v9 = vpop.f32.mrf.mxu0 }
 0x283   :  { %v301_v10 = vmax.f32 %v297_v9, 0.0 }
 0x284   :  { %v578_v11 = vpop.f32.mrf.mxu0 }
 0x285   :  { %612 = vmatmul.mubr.f32.vlgmr.msra.gmra.mxu1 %v301_v10 }
 0x345   :  { %v385_v12 = vpop.f32.mrf.mxu1 }
 0x346   :  { %389 = vst [vmem:[#allocation7] sm:$0xff] %v385_v12 }
 0x347   :  { %v613_v13 = vpop.f32.mrf.mxu1 }
 0x348   :  { %672 = shalt.err (!%p669_p0)
}
 0x349   :  { %399 = dma.vmem_to_hbm [thread:$0]  %s397_s1, 128, %s792_s2, [#allocation4]  }
 0x34a   :  { %685 = dma.done.wait [#allocation4], 128  }
 0x34b   :  { %686 = vsyncadd [#allocation4], 4294967168 }
 0x34c   :  { %403 = vsyncpa [#allocation3], 1 }
 0x34d   :  { %404 = vsyncpa [#allocation6], 1 }
 0x34e   :  { %405 = vsyncpa [#allocation4], 1 }

</bundles_post_ra>
